<compile_context>
chip_gen: v5e
topology: v5e:2x2
jax: 0.10.0
libtpu: 0.0.40
codegen_flags: <defaults>
</compile_context>

<pallas_src>
import math

import jax
import jax.numpy as jnp
from jax.experimental import pallas as pl
from jax.experimental.pallas import tpu as pltpu


def _round_up(x, n):
    return ((x + n - 1) // n) * n


# ---------------------------------------------------------------------------
# Kernel: one fused MXU pass producing [z4 | z5], f32 epilogue.
# ---------------------------------------------------------------------------
def _glu_kernel(x_ref, w_ref, b_ref, o_ref):
    # (TM, f) x (f, 2*hp) on the MXU, accumulate in f32.
    z = jnp.dot(x_ref[...], w_ref[...], preferred_element_type=jnp.float32)
    z = z + b_ref[...].astype(jnp.float32)
    hp = o_ref.shape[-1]
    z4 = z[:, :hp]   # gate pre-activation  (lane-aligned split: hp % 128 == 0)
    z5 = z[:, hp:]   # value pre-activation
    # sigmoid -> EUP slot, mul -> VALU slot, both on the f32 accumulator.
    o_ref[...] = (jax.nn.sigmoid(z4) * z5).astype(o_ref.dtype)


# ---------------------------------------------------------------------------
# One-time parameter fusion (hoisted out of the forward path).
# ---------------------------------------------------------------------------
def prepare_glu_params(w4, b4, w5, b5, dtype=None):
    """Fuse and lane-pad the two projections ONCE.

    w4, w5: (input_size, hidden_size)  (transposed vs torch Linear.weight)
    b4, b5: (hidden_size,)
    Returns (w_cat, b_cat, hidden_size): w_cat (f, 2*hp), b_cat (1, 2*hp),
    with hp = round_up(hidden_size, 128) so in-kernel split/stores are
    lane-dense.
    """
    f, h = w4.shape
    hp = _round_up(h, 128)
    pad = hp - h
    if pad:
        w4 = jnp.pad(w4, ((0, 0), (0, pad)))
        w5 = jnp.pad(w5, ((0, 0), (0, pad)))
        b4 = jnp.pad(b4, (0, pad))
        b5 = jnp.pad(b5, (0, pad))
    w_cat = jnp.concatenate([w4, w5], axis=1)            # (f, 2*hp)
    b_cat = jnp.concatenate([b4, b5]).reshape(1, 2 * hp)  # (1, 2*hp)
    if dtype is not None:
        w_cat = w_cat.astype(dtype)
        b_cat = b_cat.astype(dtype)
    return w_cat, b_cat, h


# ---------------------------------------------------------------------------
# VMEM budget / tile selection.
# ---------------------------------------------------------------------------
def _vmem_budget_bytes():
    try:
        cap = pltpu.get_tpu_info().vmem_capacity_bytes
    except Exception:
        cap = 64 * 1024 * 1024  # conservative fallback = v7x physical VMEM
    return int(0.8 * cap)


def _pick_tm(m, f, hp, x_bytes, w_bytes, out_bytes, budget):
    # Resident fused weight + bias.  Constant index_map, but budgeted at 2x
    # (default pipelining buffers) so we stay safe without relying on dedup.
    fixed = 2 * (f * 2 * hp + 2 * hp) * w_bytes
    # Per-row cost: double-buffered x tile + out tile, plus the in-kernel f32
    # (TM, 2*hp) matmul result and ~one temporary of the same width.
    per_row = 2 * f * x_bytes + 2 * hp * out_bytes + 2 * (2 * hp) * 4
    avail = budget - fixed
    if avail <= per_row * 256:
        # Weights dominate the budget (see TODO on K tiling); fall back small.
        return 256
    tm = min(2048, (avail // per_row) // 256 * 256)
    return max(tm, 256)


# ---------------------------------------------------------------------------
# Forward (inference).
# ---------------------------------------------------------------------------
def gated_linear_unit(x, w_cat, b_cat, hidden_size, *, tm=None):
    """x: (time, batch, input_size) -> (time, batch, hidden_size).

    w_cat / b_cat come from prepare_glu_params() (computed once at init).
    """
    t, b, f = x.shape
    hp2 = w_cat.shape[1]
    hp = hp2 // 2
    assert x.dtype == w_cat.dtype, (
        "activation/weight dtype mismatch would silently promote the MXU path; "
        f"got x={x.dtype}, w={w_cat.dtype}")

    m = t * b
    x2d = x.reshape(m, f)

    x_bytes = jnp.dtype(x.dtype).itemsize
    w_bytes = jnp.dtype(w_cat.dtype).itemsize
    out_bytes = x_bytes
    budget = _vmem_budget_bytes()

    if tm is None:
        tm = _pick_tm(m, f, hp, x_bytes, w_bytes, out_bytes, budget)

    # Guarantee >= 2 grid steps when M allows (both v7x TensorCores get work);
    # keep the row tile a multiple of 8 (sublane).  The partial last tile is
    # masked by Pallas, so no explicit row padding / output row slice needed.
    if m >= 2 * tm:
        tm_eff = tm
    elif m >= 16:
        tm_eff = min(tm, _round_up(pl.cdiv(m, 2), 8))
    else:
        tm_eff = _round_up(m, 8)
    n_tiles = pl.cdiv(m, tm_eff)

    cost = pl.CostEstimate(
        flops=2 * m * f * hp2,
        transcendentals=m * hp,
        bytes_accessed=(m * f) * x_bytes + (f * hp2 + hp2) * w_bytes
        + (m * hp) * out_bytes,
    )

    out2d = pl.pallas_call(
        _glu_kernel,
        out_shape=jax.ShapeDtypeStruct((m, hp), x.dtype),
        grid_spec=pltpu.PrefetchScalarGridSpec(
            num_scalar_prefetch=0,
            grid=(n_tiles,),
            in_specs=[
                pl.BlockSpec((tm_eff, f), lambda i: (i, 0)),  # x tile (pipelined)
                pl.BlockSpec((f, hp2), lambda i: (0, 0)),     # fused weights (resident)
                pl.BlockSpec((1, hp2), lambda i: (0, 0)),     # fused bias (resident)
            ],
            out_specs=pl.BlockSpec((tm_eff, hp), lambda i: (i, 0)),
        ),
        compiler_params=pltpu.CompilerParams(
            dimension_semantics=("parallel",),   # independent row tiles
            vmem_limit_bytes=budget,
        ),
        cost_estimate=cost,
    )(x2d, w_cat, b_cat)

    # Column slice only needed when hidden_size is not a multiple of 128.
    if hp != hidden_size:
        out2d = out2d[:, :hidden_size]
    return out2d.reshape(t, b, hidden_size)


def xavier_uniform(key, fan_in, fan_out, dtype=jnp.float32):
    # torch.nn.init.xavier_uniform_ : U(-a, a), a = sqrt(6 / (fan_in + fan_out))
    a = math.sqrt(6.0 / (fan_in + fan_out))
    return jax.random.uniform(key, (fan_in, fan_out), dtype=dtype, minval=-a, maxval=a)


if __name__ == "__main__":
    # Small shapes consistent with forward(): (time_step, batch, feature)
    time_step, batch, input_size, hidden_size = 8, 2, 32, 32
    key = jax.random.PRNGKey(0)
    kx, k4, k5 = jax.random.split(key, 3)

    x = jax.random.normal(kx, (time_step, batch, input_size), dtype=jnp.float32)
    # Stored as (input_size, hidden_size) == torch Linear weight transposed.
    w4 = xavier_uniform(k4, input_size, hidden_size)
    w5 = xavier_uniform(k5, input_size, hidden_size)
    b4 = jnp.zeros((hidden_size,), dtype=jnp.float32)   # init_weights(): zero bias
    b5 = jnp.zeros((hidden_size,), dtype=jnp.float32)

    # One-time parameter fusion (would live at module init / be a jit constant).
    w_cat, b_cat, h = prepare_glu_params(w4, b4, w5, b5, dtype=x.dtype)

    out = gated_linear_unit(x, w_cat, b_cat, h)
    out = jax.block_until_ready(out)

    # Pure-JAX reference check.
    ref = jax.nn.sigmoid(x @ w4 + b4) * (x @ w5 + b5)
    assert out.shape == (time_step, batch, hidden_size)
    assert jnp.allclose(out, ref, atol=1e-5, rtol=1e-5)

    print("KERNEL_OK")
</pallas_src>

<mosaic_0001>
module attributes {stable_mosaic.version = 11 : i64} {
  func.func @_glu_kernel(%arg0: i32, %arg1: memref<8x32xf32, #tpu.memory_space<vmem>>, %arg2: memref<32x256xf32, #tpu.memory_space<vmem>>, %arg3: memref<1x256xf32, #tpu.memory_space<vmem>>, %arg4: memref<8x128xf32, #tpu.memory_space<vmem>>) attributes {dimension_semantics = [#tpu.dimension_semantics<parallel>], iteration_bounds = array<i64: 2>, scalar_prefetch = 0 : i64, scratch_operands = 0 : i64, tpu.core_type = #tpu.core_type<tc>, window_params = [{transform_indices = @transform_0, window_bounds = array<i64: 8, 32>}, {pipeline_mode = #tpu.pipeline_mode<synchronous>, transform_indices = @transform_1, window_bounds = array<i64: 32, 256>}, {pipeline_mode = #tpu.pipeline_mode<synchronous>, transform_indices = @transform_2, window_bounds = array<i64: 1, 256>}, {transform_indices = @transform_3, window_bounds = array<i64: 8, 128>}]} {
    %c0 = arith.constant 0 : index
    %c0_0 = arith.constant 0 : index
    %0 = vector.load %arg1[%c0, %c0_0] : memref<8x32xf32, #tpu.memory_space<vmem>>, vector<8x32xf32>
    %c0_1 = arith.constant 0 : index
    %c0_2 = arith.constant 0 : index
    %1 = vector.load %arg2[%c0_1, %c0_2] : memref<32x256xf32, #tpu.memory_space<vmem>>, vector<32x256xf32>
    %cst = arith.constant dense<0.000000e+00> : vector<8x256xf32>
    %2 = tpu.matmul %0, %1, %cst {dimension_numbers = #tpu.dot_dimension_numbers<[1], [0], [0], [1], [0, 0, 1, 1], [], []>} : vector<8x32xf32>, vector<32x256xf32>, vector<8x256xf32> -> vector<8x256xf32>
    %c0_3 = arith.constant 0 : index
    %c0_4 = arith.constant 0 : index
    %3 = vector.load %arg3[%c0_3, %c0_4] : memref<1x256xf32, #tpu.memory_space<vmem>>, vector<1x256xf32>
    %4 = vector.broadcast %3 : vector<1x256xf32> to vector<8x256xf32>
    %5 = arith.addf %2, %4 : vector<8x256xf32>
    %6 = vector.extract_strided_slice %5 {offsets = [0, 0], sizes = [8, 128], strides = [1, 1]} : vector<8x256xf32> to vector<8x128xf32>
    %7 = vector.extract_strided_slice %5 {offsets = [0, 128], sizes = [8, 128], strides = [1, 1]} : vector<8x256xf32> to vector<8x128xf32>
    %8 = arith.negf %6 : vector<8x128xf32>
    %9 = math.exp %8 : vector<8x128xf32>
    %cst_5 = arith.constant 1.000000e+00 : f32
    %10 = vector.broadcast %cst_5 : f32 to vector<8x128xf32>
    %11 = arith.addf %10, %9 : vector<8x128xf32>
    %12 = arith.divf %10, %11 : vector<8x128xf32>
    %13 = arith.mulf %12, %7 : vector<8x128xf32>
    %c0_6 = arith.constant 0 : index
    %c0_7 = arith.constant 0 : index
    %14 = vector.load %arg4[%c0_6, %c0_7] : memref<8x128xf32, #tpu.memory_space<vmem>>, vector<8x128xf32>
    tpu.vector_store %arg4[%c0_6, %c0_7], %13 {strides = array<i32>} : memref<8x128xf32, #tpu.memory_space<vmem>>, vector<8x128xf32>,
    return
  }
  func.func @transform_0(%arg0: i32) -> (i32, i32) {
    %c0_i32 = arith.constant 0 : i32
    %c0_i32_0 = arith.constant 0 : i32
    return %arg0, %c0_i32 : i32, i32
  }
  func.func @transform_1(%arg0: i32) -> (i32, i32) {
    %c0_i32 = arith.constant 0 : i32
    %c0_i32_0 = arith.constant 0 : i32
    %c0_i32_1 = arith.constant 0 : i32
    return %c0_i32, %c0_i32_0 : i32, i32
  }
  func.func @transform_2(%arg0: i32) -> (i32, i32) {
    %c0_i32 = arith.constant 0 : i32
    %c0_i32_0 = arith.constant 0 : i32
    %c0_i32_1 = arith.constant 0 : i32
    return %c0_i32, %c0_i32_0 : i32, i32
  }
  func.func @transform_3(%arg0: i32) -> (i32, i32) {
    %c0_i32 = arith.constant 0 : i32
    %c0_i32_0 = arith.constant 0 : i32
    return %arg0, %c0_i32 : i32, i32
  }
}

</mosaic_0001>

<bundles_post_ra>
// kernel: tpu_custom_call.1
= control target key start
LH: loop header
LB: loop body
LE: loop exit
PB: predicated region body
PF: predicated region fallthrough
CT: control target
= control target key end

     0   :  { %8 = vsyncpa [#allocation3], 0  ;;  %s831_s0 = inlined_call_operand.hbm [shape: f32[16,32], index: 0, kind: input, shape index: {}]   ;;  %s832_s1 = inlined_call_operand.hbm [shape: f32[32,256], index: 1, kind: input, shape index: {}]   ;;  %s833_s2 = inlined_call_operand.hbm [shape: f32[1,256], index: 2, kind: input, shape index: {}]   ;;  %s834_s3 = inlined_call_operand.hbm [shape: f32[16,128], index: 3, kind: output, shape index: {}]  }
   0x1   :  { %10 = vsyncpa [#allocation3 + $0x1], 0 }
   0x2   :  { %11 = vsyncpa [#allocation6], 0 }
   0x3   :  { %12 = vsyncpa [#allocation4], 0 }
   0x4   :  { %14 = vsyncpa [#allocation4 + $0x1], 0  ;;  %s682_s12 = smov 0   ;;  %s684_s13 = smov 0  }
   0x5   :  { %s686_s14 = smov 0   ;;  %s688_s15 = smov 0  }
   0x6 LB: > { %s130_s18 = sshll.u32 %s832_s1, 4  ;;  %s706_s19 = sadd.s32 4294967295, %s656_s15   ;;  %s656_s15 = sphi %s688_s15, %s845_s15   ;;  %s652_s14 = sphi %s686_s14, %s844_s14   ;;  %s648_s13 = sphi %s684_s13, %s843_s13   ;;  %s644_s12 = sphi %s682_s12, %s842_s12   ;;  %s131_s18 = int_to_ptr.hbm [resolvable:$true] %s130_s18 }
   0x7   : > { %p405_p0 = scmp.ge.s32.totalorder %s656_s15, 1  ;;  %p41_p1 = scmp.eq.s32.totalorder %s706_s19, 0 }
   0x8   : > { %p119_p2 = scmp.lt.s32.totalorder %s656_s15, 3  ;;  %s658_s21 = smov [#allocation5]  }
   0x9   : > { %s132_s22 = sshll.u32 %s658_s21, 4  ;;  %s145_s25 = sshll.u32 %s833_s2, 4  ;;  %s133_s22 = int_to_ptr.vmem [resolvable:$true] %s132_s22  ;;  %s146_s25 = int_to_ptr.hbm [resolvable:$true] %s145_s25 }
   0xa   : > { %p711_p3 = pnand %p405_p0, %p119_p2  ;;  %s659_s26 = smov [#allocation7]  }
   0xb   : > { %s147_s27 = sshll.u32 %s659_s26, 4  ;;  %s660_s28 = smov 256   ;;  %s148_s27 = int_to_ptr.vmem [resolvable:$true] %s147_s27 }
   0xc   : > { %p435_p4 = pneg %p711_p3  ;;  %s661_s29 = smov 16  }
   0xd   : > { %s404_s30 = sadd.s32 4294967294, %s656_s15   ;;  %s725_s4 = sadd.s32 1, %s656_s15  }
   0xe   : > { %p436_p6 = pnand %p435_p4, %p41_p1  ;;  %s24_s5 = ssub.s32 %s656_s15, %s725_s4 }
   0xf   : > { %s27_s6 = sadd.s32 1, %s652_s14  ;;  %p25_p7 = scmp.eq.s32.totalorder %s24_s5, 0 }
  0x10   : > { %438 = dma.hbm_to_vmem [thread:$0]  (!%p436_p6), %s131_s18, 1024, %s133_s22, [#allocation6], %s660_s28, %s660_s28, %s661_s29  }
  0x11   : > { %441 = dma.hbm_to_vmem [thread:$0]  (!%p436_p6), %s146_s25, 32, %s148_s27, [#allocation6]  }
  0x12   : > { %p34_p8 = scmp.ne.s32.totalorder %s652_s14, %s648_s13  ;;  %p35_p9 = scmp.eq.s32.totalorder %s656_s15, 0 }
  0x13   : > { %p40_p10 = scmp.ne.s32.totalorder %s648_s13, %s644_s12  ;;  %p106_p13 = scmp.eq.s32.totalorder %s706_s19, 1 }
  0x14   : > { %s736_s7 = scalar_select %p25_p7, %s652_s14, %s27_s6  }
  0x15   : > { %p738_p11 = por %p35_p9, %p34_p8  ;;  %p744_p12 = por %p41_p1, %p40_p10 }
  0x16   : > { %p112_p0 = scmp.eq.s32.totalorder %s404_s30, 1  ;;  %p452_p2 = scmp.lt.s32.totalorder %s656_s15, 2 }
  0x17   : > { %s158_s10 = sand.u32 1, %s652_s14   ;;  %p751_p4 = por %p106_p13, %p34_p8 }
  0x18   : > { %p755_p6 = por %p112_p0, %p40_p10  ;;  %s409_s17 = sshll.u32 %s158_s10, 3 }
  0x19   : > { %s410_s18 = sshll.u32 %s656_s15, 3  ;;  %s162_s24 = scalar_lea.vmem [#allocation2], %s409_s17 }
  0x1a   : > { %s166_s23 = scalar_lea.hbm %s831_s0, %s410_s18  ;;  %s170_s25 = sshll.u32 %s162_s24, 4  ;;  %s171_s25 = int_to_ptr.vmem [resolvable:$true] %s170_s25 }
  0x1b   : > { %s168_s26 = sshll.u32 %s166_s23, 4  ;;  %p765_p7 = pnand %p452_p2, %p738_p11  ;;  %s169_s26 = int_to_ptr.hbm [resolvable:$true] %s168_s26 }
  0x1c   : > { %s159_s28 = scalar_lea.sflag [#allocation3], %s158_s10  ;;  %s556_s29 = sshra.s32 %s169_s26, 4  ;;  %s557_s29 = int_to_ptr.hbm [resolvable:$true] %s556_s29 }
  0x1d   : > { %s558_s30 = scalar_lea.hbm %s557_s29, 8  ;;  %p560_p9 = pneg %p765_p7 }
  0x1e   : > { %p559_p8 = scmp.ne.s32.totalorder %s557_s29, %s558_s30  ;;  %s563_s17 = scalar_lea.hbm %s831_s0, 16 }
  0x1f   : > { %p564_p11 = scmp.lt.s32.totalorder %s557_s29, %s831_s0  ;;  %p565_p0 = scmp.lt.s32.totalorder %s563_s17, %s558_s30 }
  0x20   : > { %p561_p10 = pnand %p560_p9, %p559_p8 }
  0x21   : > { %p566_p2 = por %p565_p0, %p564_p11 }
  0x22   : > { %p562_p13 = pneg %p561_p10 }
  0x24   : > { %p567_p5 = pnand %p566_p2, %p562_p13 }
  0x26   : > { %570 = shalt.err (!%p567_p5)
}
  0x27   : > { %445 = dma.hbm_to_vmem [thread:$0]  (!%p765_p7), %s169_s26, 128, %s171_s25, %s159_s28  }
  0x28   : > { %179 = sbr.rel (%p711_p3) target bundleno = 217 (0xd9), region = 32  ;;  %s782_s10 = sand.u32 (!%p711_p3), 1, %s648_s13  }
  0x29   : > { %s412_s21 = sshll.u32 (!%p711_p3), %s782_s10, 3  ;;  %s182_s22 = scalar_lea.sflag (!%p711_p3), [#allocation3], %s782_s10 }
  0x2a   : > { %s185_s23 = scalar_lea.vmem (!%p711_p3), [#allocation2], %s412_s21 }
  0x2d   : > { %631 = dma.done.wait (%p744_p12), %s182_s22, 128  }
  0x2e   : > { %633 = vsyncadd (%p744_p12), %s182_s22, 4294967168 }
  0x2f   : > { %635 = dma.done.wait (%p41_p1), [#allocation6], 1056  }
  0x30   : > { %637 = vsyncadd (%p41_p1), [#allocation6], 4294966240  ;;  %v226_v0 = vld [vmem:[#allocation5 + $0x30] sm:$0xff]  ;;  %v224_v1 = vld [vmem:[#allocation5 + $0x20] sm:$0xff]  ;;  %vm234_vm0 = vcmask 261120   ;;  %s420_s20 = sshll.u32 %s706_s19, 3 }
  0x31   : > { %250 = vmatpush.msra.mxu0 %v226_v0  ;;  %v227_v2 = vld [vmem:[#allocation5 + $0x38] sm:$0xff]  ;;  %v222_v3 = vld [vmem:[#allocation5 + $0x10] sm:$0xff]  ;;  %v225_v4 = vld [vmem:[#allocation5 + $0x28] sm:$0xff]  ;;  %s310_s25 = scalar_lea.hbm %s834_s3, %s420_s20  ;;  %s218_s19 = scalar_lea.vmem [#allocation8], %s412_s21 }
  0x32   : > { %270 = vmatpush.msra.mxu1 %v227_v2  ;;  %v223_v5 = vld [vmem:[#allocation5 + $0x18] sm:$0xff]  ;;  %v220_v6 = vld [vmem:[#allocation5] sm:$0xff]  ;;  %v221_v8 = vld [vmem:[#allocation5 + $0x8] sm:$0xff]  ;;  %s312_s26 = sshll.u32 %s218_s19, 4  ;;  %s314_s27 = sshll.u32 %s310_s25, 4  ;;  %s313_s26 = int_to_ptr.vmem [resolvable:$true] %s312_s26  ;;  %s315_s27 = int_to_ptr.hbm [resolvable:$true] %s314_s27 }
  0x33   : > { %251 = vmatpush.msra.mxu0 %v224_v1  ;;  %v219_v7 = vld [vmem:[%s185_s23] sm:$0xff]  ;;  %v228_v9 = vld [vmem:[#allocation7] sm:$0x3]  ;;  %s300_s28 = scalar_lea.sflag [#allocation4], %s782_s10  ;;  %s600_s29 = sshra.s32 %s315_s27, 4  ;;  %s601_s29 = int_to_ptr.hbm [resolvable:$true] %s600_s29 }
  0x34   : > { %271 = vmatpush.msra.mxu1 %v225_v4  ;;  %v230_v10 = vperm.slane %v228_v9, 0  ;;  %v231_v18 = vperm.slane %v228_v9, 1  ;;  %s602_s30 = scalar_lea.hbm %s601_s29, 8  ;;  %s606_s17 = scalar_lea.hbm %s834_s3, 16 }
  0x35   : > { %252 = vmatpush.msra.mxu0 %v222_v3  ;;  %p603_p1 = scmp.ne.s32.totalorder %s601_s29, %s602_s30  ;;  %p607_p12 = scmp.lt.s32.totalorder %s601_s29, %s834_s3 }
  0x36   : > { %272 = vmatpush.msra.mxu1 %v223_v5  ;;  %p608_p7 = scmp.lt.s32.totalorder %s606_s17, %s602_s30 }
  0x37   : > { %253 = vmatpush.msra.mxu0 %v220_v6  ;;  %p604_p3 = pnand %p603_p1, %p751_p4 }
  0x38   : > { %416 = vmatmul.msk.f32.vlgmr.msra.gmra.mxu0 %vm234_vm0, %v219_v7  ;;  %273 = vmatpush.msra.mxu1 %v221_v8  ;;  %p609_p8 = por %p608_p7, %p607_p12 }
  0x39   : > { %417 = vmatmul.msk.f32.vlgmr.msra.gmra.mxu1 %vm234_vm0, %v219_v7  ;;  %p605_p5 = pneg %p604_p3 }
  0x3b   : > { %p610_p9 = pnand %p609_p8, %p605_p5 }
  0xb5   : > { %v255_v11 = vpop.f32.mrf.mxu0 }
  0xb6   : > { %v256_v12 = vadd.f32 %v255_v11, %v230_v10  ;;  %v275_v20 = vpop.f32.mrf.mxu1 }
  0xb7   : > { %v276_v24 = vadd.f32 %v275_v20, %v231_v18 }
  0xb8   : > { %v418_v13 = vmul.f32 -1.442695, %v256_v12 }
  0xba   : > { %492 = vpow2.f32 %v418_v13 }
  0xc0   : > { %v493_v14 = vpop.eup %492 }
  0xc1   : > { %v281_v15 = vadd.f32 1.0, %v493_v14 }
  0xc3   : > { %494 = vrcp.f32 %v281_v15  ;;  %v293_v21 = vand.u32 2147483648, %v281_v15  ;;  %v291_v23 = vand.u32 2147483647, %v281_v15  ;;  %vm287_vm2 = vweird.f32 %v281_v15 }
  0xc5   : > { %v294_v26 = vor.u32 1.1754944e-38, %v293_v21  ;;  %vm292_vm4 = vcmp.eq.f32.partialorder %v291_v23, 8.507059e+37 }
  0xc9   : > { %v495_v16 = vpop.eup %494 }
  0xca   : > { %v283_v17 = vmul.f32 %v495_v16, %v281_v15  ;;  %vm288_vm1 = vweird.f32 %v495_v16 }
  0xcb   : > { %vm289_vm3 = vmor %vm287_vm2, %vm288_vm1 }
  0xcc   : > { %v284_v19 = vsub.f32 1.0, %v283_v17 }
  0xce   : > { %v285_v22 = vmul.f32 %v495_v16, %v284_v19 }
  0xd0   : > { %v286_v25 = vadd.f32 %v495_v16, %v285_v22 }
  0xd2   : > { %v290_v27 = vsel %vm289_vm3, %v495_v16, %v286_v25 }
  0xd3   : > { %v295_v28 = vsel %vm292_vm4, %v294_v26, %v290_v27 }
  0xd4   : > { %v297_v29 = vmul.f32 %v295_v28, %v276_v24 }
  0xd6   : > { %298 = vst [vmem:[%s218_s19] sm:$0xff] %v297_v29 }
  0xd7   : > { %613 = shalt.err (!%p610_p9)
}
  0xd8   : > { %433 = dma.vmem_to_hbm [thread:$0]  (%p751_p4), %s313_s26, 128, %s315_s27, %s300_s28  }
  0xd9 PF: > { %s326_s10 = sand.u32 1, %s644_s12   ;;  %p841_p10 = scmp.ge.s32.totalorder %s656_s15, 2 }
  0xda   : > { %s327_s21 = scalar_lea.sflag [#allocation4], %s326_s10 }
  0xdb   : > { %p447_p13 = pnand %p841_p10, %p755_p6 }
  0xdd   : > { %p448_p11 = pneg %p447_p13 }
  0xdf   : > { %639 = dma.done.wait (%p448_p11), %s327_s21, 128  }
  0xe0   : > { %641 = vsyncadd (%p448_p11), %s327_s21, 4294967168  ;;  %p17_p0 = scmp.ge.s32.totalorder %s725_s4, 4   ;;  %s842_s12 = smov %s648_s13 }
  0xe1   : > { %s843_s13 = smov %s652_s14  ;;  %s844_s14 = smov %s736_s7 }
  0xe2   : > { %s845_s15 = smov %s725_s4  ;;  %19 = sbr.rel (!%p17_p0) target bundleno = 6 (0x6), region = 85 }
  0xe7   :  { %333 = vsyncpa [#allocation3], 1 }
  0xe8   :  { %335 = vsyncpa [#allocation3 + $0x1], 1 }
  0xe9   :  { %336 = vsyncpa [#allocation6], 1 }
  0xea   :  { %337 = vsyncpa [#allocation4], 1 }
  0xeb   :  { %339 = vsyncpa [#allocation4 + $0x1], 1 }

</bundles_post_ra>
